<compile_context>
chip_gen: v5e
topology: v5e:2x2
jax: 0.10.0
libtpu: 0.0.40
codegen_flags: <defaults>
</compile_context>

<pallas_src>
import jax
import jax.numpy as jnp
from jax.experimental import pallas as pl
from jax.experimental.pallas import tpu as pltpu

hidden_size = 16
input_size = 28 * 28          # 784
output_size = 10

# Lane-dense padded feature sizes (batch/K are NOT padded).
HID_PAD = 128
OUT_PAD = 128

_NEG_BIG = -1e30              # exp(_NEG_BIG - m) underflows to exactly 0 in f32


def mnist_mlp_kernel(x_ref, w1_ref, b1_ref, w2_ref, b2_ref, o_ref):
    # fc1: cast x tile to bf16 for the MXU, accumulate in f32, bias + ReLU in f32.
    x = x_ref[...].astype(jnp.bfloat16)
    h = jnp.dot(x, w1_ref[...], preferred_element_type=jnp.float32)
    h = jnp.maximum(h + b1_ref[...], 0.0)

    # fc2: bf16 MXU inputs, f32 accumulation, bias + ReLU in f32.
    z = jnp.dot(h.astype(jnp.bfloat16), w2_ref[...],
                preferred_element_type=jnp.float32)
    z = jnp.maximum(z + b2_ref[...], 0.0)

    # Mask padded class columns so they contribute exactly 0 to the softmax.
    # (Must be applied AFTER the ReLU: padded columns are 0 there.)
    col_ids = jax.lax.broadcasted_iota(jnp.int32, z.shape, 1)
    z = jnp.where(col_ids < output_size, z, _NEG_BIG)

    # Softmax over the class axis (dim=1) — exact normalization.
    m = jnp.max(z, axis=1, keepdims=True)
    e = jnp.exp(z - m)
    s = jnp.sum(e, axis=1, keepdims=True)
    o_ref[...] = (e / s).astype(o_ref.dtype)


def init_params(key):
    """PyTorch nn.Linear-style init, returned transposed and zero-padded.

    w1_t: (784, HID_PAD)    bf16  (logical 784x16)
    b1  : (1, HID_PAD)      f32   (logical 16)
    w2_t: (HID_PAD, OUT_PAD) bf16 (logical 16x10)
    b2  : (1, OUT_PAD)      f32   (logical 10)
    """
    k1, k2, k3, k4 = jax.random.split(key, 4)
    bound1 = 1.0 / jnp.sqrt(jnp.float32(input_size))
    bound2 = 1.0 / jnp.sqrt(jnp.float32(hidden_size))

    w1_t = jax.random.uniform(k1, (input_size, hidden_size), jnp.float32, -bound1, bound1)
    b1 = jax.random.uniform(k2, (hidden_size,), jnp.float32, -bound1, bound1)
    w2_t = jax.random.uniform(k3, (hidden_size, output_size), jnp.float32, -bound2, bound2)
    b2 = jax.random.uniform(k4, (output_size,), jnp.float32, -bound2, bound2)

    w1_p = jnp.zeros((input_size, HID_PAD), jnp.float32).at[:, :hidden_size].set(w1_t)
    b1_p = jnp.zeros((1, HID_PAD), jnp.float32).at[0, :hidden_size].set(b1)
    w2_p = jnp.zeros((HID_PAD, OUT_PAD), jnp.float32).at[:hidden_size, :output_size].set(w2_t)
    b2_p = jnp.zeros((1, OUT_PAD), jnp.float32).at[0, :output_size].set(b2)

    return w1_p.astype(jnp.bfloat16), b1_p, w2_p.astype(jnp.bfloat16), b2_p


def _pick_tb(B: int) -> int:
    """Batch tile: target 256 rows/step (fills the 256-wide MXU on v6e/v7x and
    amortizes ~0.35us/step grid overhead), but keep >=2 grid steps so v7x's
    two TensorCores both get work; floor at 16 sublanes for bf16 packing."""
    tb = 256
    while tb > 16 and pl.cdiv(B, tb) < 2:
        tb //= 2
    return tb


def mnist_forward(x, w1_p, b1_p, w2_p, b2_p, *, tb=None):
    """x: (B, 784) f32 (or bf16). Returns (B, 10) f32 softmax probabilities."""
    B = x.shape[0]
    if tb is None:
        tb = _pick_tb(B)
    Bp = pl.cdiv(B, tb) * tb

    # Only pad the batch remainder (no-op in the common case); no column pad,
    # no standalone bf16 pre-cast — the kernel casts in VMEM.
    x_in = x if Bp == B else jnp.pad(x, ((0, Bp - B), (0, 0)))

    grid = (Bp // tb,)

    cost = pl.CostEstimate(
        flops=2 * Bp * input_size * HID_PAD + 2 * Bp * HID_PAD * OUT_PAD,
        transcendentals=Bp * OUT_PAD,
        bytes_accessed=(x_in.size * x_in.dtype.itemsize
                        + w1_p.size * 2 + w2_p.size * 2
                        + b1_p.size * 4 + b2_p.size * 4
                        + Bp * OUT_PAD * 4),
    )

    out = pl.pallas_call(
        mnist_mlp_kernel,
        out_shape=jax.ShapeDtypeStruct((Bp, OUT_PAD), jnp.float32),
        grid_spec=pltpu.PrefetchScalarGridSpec(
            num_scalar_prefetch=0,
            grid=grid,
            in_specs=[
                pl.BlockSpec((tb, input_size), lambda i: (i, 0)),     # x tile (streamed)
                pl.BlockSpec((input_size, HID_PAD), lambda i: (0, 0)),  # w1 (resident)
                pl.BlockSpec((1, HID_PAD), lambda i: (0, 0)),           # b1 (resident)
                pl.BlockSpec((HID_PAD, OUT_PAD), lambda i: (0, 0)),     # w2 (resident)
                pl.BlockSpec((1, OUT_PAD), lambda i: (0, 0)),           # b2 (resident)
            ],
            out_specs=pl.BlockSpec((tb, OUT_PAD), lambda i: (i, 0)),
        ),
        compiler_params=pltpu.CompilerParams(
            dimension_semantics=("parallel",),
        ),
        cost_estimate=cost,
    )(x_in, w1_p, b1_p, w2_p, b2_p)

    return out[:B, :output_size]


if __name__ == "__main__":
    key = jax.random.PRNGKey(0)
    kx, kp = jax.random.split(key)

    batch = 32
    x = jax.random.normal(kx, (batch, input_size), jnp.float32)
    w1_p, b1_p, w2_p, b2_p = init_params(kp)

    out = mnist_forward(x, w1_p, b1_p, w2_p, b2_p)
    out = jax.block_until_ready(out)

    # Sanity: shape and softmax rows sum to ~1 (exact division in the kernel).
    assert out.shape == (batch, output_size)
    assert jnp.allclose(jnp.sum(out, axis=1), 1.0, atol=1e-3)

    # Pure-JAX reference doing the same bf16-operand / f32-accumulate math.
    xb = x.astype(jnp.bfloat16)
    h_ref = jnp.maximum(
        jnp.dot(xb, w1_p, preferred_element_type=jnp.float32) + b1_p, 0.0)
    z_ref = jnp.maximum(
        jnp.dot(h_ref.astype(jnp.bfloat16), w2_p,
                preferred_element_type=jnp.float32) + b2_p, 0.0)
    ref = jax.nn.softmax(z_ref[:, :output_size], axis=1)

    assert jnp.allclose(out, ref, atol=2e-3), float(jnp.max(jnp.abs(out - ref)))

    print("KERNEL_OK")
</pallas_src>

<mosaic_0001>
module attributes {stable_mosaic.version = 11 : i64} {
  func.func @mnist_mlp_kernel(%arg0: i32, %arg1: memref<16x784xf32, #tpu.memory_space<vmem>>, %arg2: memref<784x128xbf16, #tpu.memory_space<vmem>>, %arg3: memref<1x128xf32, #tpu.memory_space<vmem>>, %arg4: memref<128x128xbf16, #tpu.memory_space<vmem>>, %arg5: memref<1x128xf32, #tpu.memory_space<vmem>>, %arg6: memref<16x128xf32, #tpu.memory_space<vmem>>) attributes {dimension_semantics = [#tpu.dimension_semantics<parallel>], iteration_bounds = array<i64: 2>, scalar_prefetch = 0 : i64, scratch_operands = 0 : i64, tpu.core_type = #tpu.core_type<tc>, window_params = [{transform_indices = @transform_0, window_bounds = array<i64: 16, 784>}, {pipeline_mode = #tpu.pipeline_mode<synchronous>, transform_indices = @transform_1, window_bounds = array<i64: 784, 128>}, {pipeline_mode = #tpu.pipeline_mode<synchronous>, transform_indices = @transform_2, window_bounds = array<i64: 1, 128>}, {pipeline_mode = #tpu.pipeline_mode<synchronous>, transform_indices = @transform_3, window_bounds = array<i64: 128, 128>}, {pipeline_mode = #tpu.pipeline_mode<synchronous>, transform_indices = @transform_4, window_bounds = array<i64: 1, 128>}, {transform_indices = @transform_5, window_bounds = array<i64: 16, 128>}]} {
    %c0 = arith.constant 0 : index
    %c0_0 = arith.constant 0 : index
    %0 = vector.load %arg1[%c0, %c0_0] : memref<16x784xf32, #tpu.memory_space<vmem>>, vector<16x784xf32>
    %1 = arith.truncf %0 : vector<16x784xf32> to vector<16x784xbf16>
    %c0_1 = arith.constant 0 : index
    %c0_2 = arith.constant 0 : index
    %2 = vector.load %arg2[%c0_1, %c0_2] : memref<784x128xbf16, #tpu.memory_space<vmem>>, vector<784x128xbf16>
    %cst = arith.constant dense<0.000000e+00> : vector<16x128xf32>
    %3 = tpu.matmul %1, %2, %cst {dimension_numbers = #tpu.dot_dimension_numbers<[1], [0], [0], [1], [0, 0, 1, 1], [], []>} : vector<16x784xbf16>, vector<784x128xbf16>, vector<16x128xf32> -> vector<16x128xf32>
    %c0_3 = arith.constant 0 : index
    %c0_4 = arith.constant 0 : index
    %4 = vector.load %arg3[%c0_3, %c0_4] : memref<1x128xf32, #tpu.memory_space<vmem>>, vector<1x128xf32>
    %5 = vector.broadcast %4 : vector<1x128xf32> to vector<16x128xf32>
    %6 = arith.addf %3, %5 : vector<16x128xf32>
    %cst_5 = arith.constant 0.000000e+00 : f32
    %7 = vector.broadcast %cst_5 : f32 to vector<16x128xf32>
    %8 = arith.maximumf %6, %7 : vector<16x128xf32>
    %9 = arith.truncf %8 : vector<16x128xf32> to vector<16x128xbf16>
    %c0_6 = arith.constant 0 : index
    %c0_7 = arith.constant 0 : index
    %10 = vector.load %arg4[%c0_6, %c0_7] : memref<128x128xbf16, #tpu.memory_space<vmem>>, vector<128x128xbf16>
    %cst_8 = arith.constant dense<0.000000e+00> : vector<16x128xf32>
    %11 = tpu.matmul %9, %10, %cst_8 {dimension_numbers = #tpu.dot_dimension_numbers<[1], [0], [0], [1], [0, 0, 1, 1], [], []>} : vector<16x128xbf16>, vector<128x128xbf16>, vector<16x128xf32> -> vector<16x128xf32>
    %c0_9 = arith.constant 0 : index
    %c0_10 = arith.constant 0 : index
    %12 = vector.load %arg5[%c0_9, %c0_10] : memref<1x128xf32, #tpu.memory_space<vmem>>, vector<1x128xf32>
    %13 = vector.broadcast %12 : vector<1x128xf32> to vector<16x128xf32>
    %14 = arith.addf %11, %13 : vector<16x128xf32>
    %cst_11 = arith.constant 0.000000e+00 : f32
    %15 = vector.broadcast %cst_11 : f32 to vector<16x128xf32>
    %16 = arith.maximumf %14, %15 : vector<16x128xf32>
    %17 = tpu.iota {dimensions = array<i32: 1>} : vector<16x128xi32>
    %c10_i32 = arith.constant 10 : i32
    %18 = vector.broadcast %c10_i32 : i32 to vector<16x128xi32>
    %19 = arith.cmpi slt, %17, %18 : vector<16x128xi32>
    %cst_12 = arith.constant -1.000000e+30 : f32
    %20 = vector.broadcast %cst_12 : f32 to vector<16x128xf32>
    %21 = arith.select %19, %16, %20 : vector<16x128xi1>, vector<16x128xf32>
    %cst_13 = arith.constant dense<0xFF800000> : vector<16xf32>
    %22 = vector.multi_reduction <maximumf>, %21, %cst_13 [1] : vector<16x128xf32> to vector<16xf32>
    %23 = vector.shape_cast %22 : vector<16xf32> to vector<16x1xf32>
    %24 = vector.broadcast %23 : vector<16x1xf32> to vector<16x128xf32>
    %25 = arith.subf %21, %24 : vector<16x128xf32>
    %26 = math.exp %25 : vector<16x128xf32>
    %cst_14 = arith.constant dense<0.000000e+00> : vector<16xf32>
    %27 = vector.multi_reduction <add>, %26, %cst_14 [1] : vector<16x128xf32> to vector<16xf32>
    %28 = vector.shape_cast %27 : vector<16xf32> to vector<16x1xf32>
    %29 = vector.broadcast %28 : vector<16x1xf32> to vector<16x128xf32>
    %30 = arith.divf %26, %29 : vector<16x128xf32>
    %c0_15 = arith.constant 0 : index
    %c0_16 = arith.constant 0 : index
    %31 = vector.load %arg6[%c0_15, %c0_16] : memref<16x128xf32, #tpu.memory_space<vmem>>, vector<16x128xf32>
    tpu.vector_store %arg6[%c0_15, %c0_16], %30 {strides = array<i32>} : memref<16x128xf32, #tpu.memory_space<vmem>>, vector<16x128xf32>,
    return
  }
  func.func @transform_0(%arg0: i32) -> (i32, i32) {
    %c0_i32 = arith.constant 0 : i32
    %c0_i32_0 = arith.constant 0 : i32
    return %arg0, %c0_i32 : i32, i32
  }
  func.func @transform_1(%arg0: i32) -> (i32, i32) {
    %c0_i32 = arith.constant 0 : i32
    %c0_i32_0 = arith.constant 0 : i32
    %c0_i32_1 = arith.constant 0 : i32
    return %c0_i32, %c0_i32_0 : i32, i32
  }
  func.func @transform_2(%arg0: i32) -> (i32, i32) {
    %c0_i32 = arith.constant 0 : i32
    %c0_i32_0 = arith.constant 0 : i32
    %c0_i32_1 = arith.constant 0 : i32
    return %c0_i32, %c0_i32_0 : i32, i32
  }
  func.func @transform_3(%arg0: i32) -> (i32, i32) {
    %c0_i32 = arith.constant 0 : i32
    %c0_i32_0 = arith.constant 0 : i32
    %c0_i32_1 = arith.constant 0 : i32
    return %c0_i32, %c0_i32_0 : i32, i32
  }
  func.func @transform_4(%arg0: i32) -> (i32, i32) {
    %c0_i32 = arith.constant 0 : i32
    %c0_i32_0 = arith.constant 0 : i32
    %c0_i32_1 = arith.constant 0 : i32
    return %c0_i32, %c0_i32_0 : i32, i32
  }
  func.func @transform_5(%arg0: i32) -> (i32, i32) {
    %c0_i32 = arith.constant 0 : i32
    %c0_i32_0 = arith.constant 0 : i32
    return %arg0, %c0_i32 : i32, i32
  }
}

</mosaic_0001>

<bundles_post_ra>
// kernel: tpu_custom_call.1
= control target key start
LH: loop header
LB: loop body
LE: loop exit
PB: predicated region body
PF: predicated region fallthrough
CT: control target
= control target key end

     0   :  { %s1801_s0 = inlined_call_operand.hbm [shape: f32[32,784], index: 0, kind: input, shape index: {}]   ;;  %s1802_s1 = inlined_call_operand.hbm [shape: bf16[784,128], index: 1, kind: input, shape index: {}]   ;;  %s1803_s2 = inlined_call_operand.vmem [shape: f32[1,128], index: 2, kind: input, shape index: {}]   ;;  %s1804_s3 = inlined_call_operand.hbm [shape: bf16[128,128], index: 3, kind: input, shape index: {}]   ;;  %s1805_s4 = inlined_call_operand.vmem [shape: f32[1,128], index: 4, kind: input, shape index: {}]   ;;  %s1806_s5 = inlined_call_operand.hbm [shape: f32[32,128], index: 5, kind: output, shape index: {}]  }
   0x1   :  { %1807 = sst [smem:[#allocation12_spill]] %s1802_s1 }
   0x2   :  { %10 = vsyncpa [#allocation3], 0 }
   0x3   :  { %12 = vsyncpa [#allocation3 + $0x1], 0 }
   0x4   :  { %13 = vsyncpa [#allocation6], 0 }
   0x5   :  { %14 = vsyncpa [#allocation4], 0 }
   0x6   :  { %16 = vsyncpa [#allocation4 + $0x1], 0  ;;  %s1637_s18 = smov 0   ;;  %s1639_s19 = smov 0  }
   0x7   :  { %s1641_s20 = smov 0   ;;  %s1643_s21 = smov 0  }
   0x8 LB: > { %s1658_s22 = sadd.s32 4294967295, %s1597_s21   ;;  %s1047_s23 = sadd.s32 4294967294, %s1597_s21   ;;  %s1597_s21 = sphi %s1643_s21, %s1818_s21   ;;  %s1593_s20 = sphi %s1641_s20, %s1817_s20   ;;  %s1589_s19 = sphi %s1639_s19, %s1816_s19   ;;  %s1585_s18 = sphi %s1637_s18, %s1815_s18  }
   0x9   : > { %p42_p0 = scmp.ne.s32.totalorder %s1589_s19, %s1585_s18  ;;  %p43_p1 = scmp.eq.s32.totalorder %s1658_s22, 0 }
   0xa   : > { %p150_p2 = scmp.eq.s32.totalorder %s1658_s22, 1  ;;  %p156_p3 = scmp.eq.s32.totalorder %s1047_s23, 1 }
   0xb   : > { %p1667_p4 = por %p43_p1, %p42_p0  ;;  %p1048_p5 = scmp.ge.s32.totalorder %s1597_s21, 1 }
   0xc   : > { %p1672_p6 = por %p156_p3, %p42_p0  ;;  %p163_p7 = scmp.lt.s32.totalorder %s1597_s21, 3 }
   0xd   : > { %s1810_s1 = sld [smem:[#allocation12_spill]]  ;;  %s1599_s30 = smov [#allocation5]  }
   0xe   : > { %p1680_p8 = pnand %p1048_p5, %p163_p7  ;;  %s176_s6 = sshll.u32 %s1599_s30, 4  ;;  %s177_s6 = int_to_ptr.vmem [resolvable:$true] %s176_s6 }
   0xf   : > { %s191_s9 = sshll.u32 %s1804_s3, 4  ;;  %s1600_s10 = smov 64   ;;  %s192_s9 = int_to_ptr.hbm [resolvable:$true] %s191_s9 }
  0x10   : > { %p1366_p9 = pneg %p1680_p8  ;;  %s1601_s11 = smov 4  }
  0x11   : > { %s1602_s12 = smov [#allocation7]   ;;  %s1693_s14 = sadd.s32 1, %s1597_s21  }
  0x12   : > { %p1367_p10 = pnand %p1366_p9, %p43_p1  ;;  %s193_s13 = sshll.u32 %s1602_s12, 4  ;;  %s194_s13 = int_to_ptr.vmem [resolvable:$true] %s193_s13 }
  0x13   : > { %s174_s28 = sshll.u32 %s1810_s1, 4  ;;  %s29_s15 = sadd.s32 1, %s1593_s20  ;;  %s175_s28 = int_to_ptr.hbm [resolvable:$true] %s174_s28 }
  0x14   : > { %1369 = dma.hbm_to_vmem [thread:$0]  (!%p1367_p10), %s175_s28, 6272, %s177_s6, [#allocation6], %s1600_s10, %s1600_s10, %s1601_s11  }
  0x15   : > { %1372 = dma.hbm_to_vmem [thread:$0]  (!%p1367_p10), %s192_s9, 1024, %s194_s13, [#allocation6], %s1600_s10, %s1600_s10, %s1601_s11  }
  0x16   : > { %s26_s16 = ssub.s32 %s1597_s21, %s1693_s14  ;;  %p36_p12 = scmp.ne.s32.totalorder %s1593_s20, %s1589_s19 }
  0x17   : > { %p27_p13 = scmp.eq.s32.totalorder %s26_s16, 0  ;;  %p37_p0 = scmp.eq.s32.totalorder %s1597_s21, 0 }
  0x18   : > { %p1703_p3 = por %p150_p2, %p36_p12  ;;  %p1383_p5 = scmp.lt.s32.totalorder %s1597_s21, 2 }
  0x19   : > { %s1709_s23 = scalar_select %p27_p13, %s1593_s20, %s29_s15  }
  0x1a   : > { %p38_p7 = por %p37_p0, %p36_p12  ;;  %s210_s26 = sand.u32 1, %s1593_s20  }
  0x1b   : > { %s1351_s27 = smul.u32 112, %s210_s26  ;;  %s211_s12 = scalar_lea.sflag [#allocation3], %s210_s26 }
  0x1c   : > { %s1352_s28 = smul.u32 112, %s1597_s21  ;;  %p1713_p9 = pnand %p1383_p5, %p38_p7 }
  0x1d   : > { %s214_s9 = scalar_lea.vmem [#allocation2], %s1351_s27  ;;  %s1504_s6 = scalar_lea.hbm %s1801_s0, 224 }
  0x1e   : > { %s220_s8 = scalar_lea.hbm %s1801_s0, %s1352_s28  ;;  %s223_s10 = sshll.u32 %s214_s9, 4  ;;  %s224_s10 = int_to_ptr.vmem [resolvable:$true] %s223_s10 }
  0x1f   : > { %s221_s11 = sshll.u32 %s220_s8, 4  ;;  %p1501_p10 = pneg %p1713_p9  ;;  %s222_s11 = int_to_ptr.hbm [resolvable:$true] %s221_s11 }
  0x20   : > { %s1497_s13 = sshra.s32 %s222_s11, 4  ;;  %s1498_s13 = int_to_ptr.hbm [resolvable:$true] %s1497_s13 }
  0x21   : > { %s1499_s15 = scalar_lea.hbm %s1498_s13, 112  ;;  %p1505_p0 = scmp.lt.s32.totalorder %s1498_s13, %s1801_s0 }
  0x22   : > { %p1500_p2 = scmp.ne.s32.totalorder %s1498_s13, %s1499_s15  ;;  %p1506_p5 = scmp.lt.s32.totalorder %s1504_s6, %s1499_s15 }
  0x24   : > { %p1502_p12 = pnand %p1501_p10, %p1500_p2  ;;  %p1507_p7 = por %p1506_p5, %p1505_p0 }
  0x26   : > { %p1503_p13 = pneg %p1502_p12 }
  0x28   : > { %p1508_p11 = pnand %p1507_p7, %p1503_p13 }
  0x2a   : > { %1511 = shalt.err (!%p1508_p11)
}
  0x2b   : > { %s1603_s26 = smov 896   ;;  %s1604_s27 = smov 56  }
  0x2c   : > { %1376 = dma.hbm_to_vmem [thread:$0]  (!%p1713_p9), %s222_s11, 1792, %s224_s10, %s211_s12, %s1603_s26, %s1603_s26, %s1604_s27  }
  0x2d   : > { %235 = sbr.rel (%p1680_p8) target bundleno = 672 (0x2a0), region = 40  ;;  %s1733_s1 = sand.u32 (!%p1680_p8), 1, %s1589_s19  }
  0x2e   : > { %s1353_s8 = smul.u32 (!%p1680_p8), 112, %s1733_s1  ;;  %s238_s9 = scalar_lea.sflag (!%p1680_p8), [#allocation3], %s1733_s1 }
  0x30   : > { %s1737_s13 = scalar_lea.vmem (!%p1680_p8), [#allocation2], %s1353_s8 }
  0x32   : > { %1572 = dma.done.wait (%p1667_p4), %s238_s9, 1792  }
  0x33   : > { %1574 = vsyncadd (%p1667_p4), %s238_s9, 4294965504 }
  0x34   : > { %1576 = dma.done.wait (%p43_p1), [#allocation6], 7296  }
  0x35   : > { %1578 = vsyncadd (%p43_p1), [#allocation6], 4294960000  ;;  %v1300_v0 = vld [vmem:[#allocation5 + $0x38] sm:$0xff]  ;;  %v1299_v4 = vld [vmem:[#allocation5 + $0x30] sm:$0xff]  ;;  %vm699_vm0 = vcmask 130048   ;;  %s1058_s11 = sshll.u32 %s1733_s1, 4 }
  0x36   : > { %v1308_v1 = vld [vmem:[#allocation5 + $0x78] sm:$0xff]  ;;  %703 = vmatpush.bf16.msra.mxu0 %v1300_v0  ;;  %v1307_v5 = vld [vmem:[#allocation5 + $0x70] sm:$0xff]  ;;  %v1298_v8 = vld [vmem:[#allocation5 + $0x28] sm:$0xff]  ;;  %s1350_s12 = sshll.u32 %s1658_s22, 4  ;;  %s278_s7 = scalar_lea.vmem [#allocation8], %s1058_s11 }
  0x37   : > { %v1316_v2 = vld [vmem:[#allocation5 + $0xb8] sm:$0xff]  ;;  %717 = vmatpush.bf16.msra.mxu1 %v1308_v1  ;;  %v1315_v6 = vld [vmem:[#allocation5 + $0xb0] sm:$0xff]  ;;  %v1306_v9 = vld [vmem:[#allocation5 + $0x68] sm:$0xff]  ;;  %s951_s6 = scalar_lea.hbm %s1806_s5, %s1350_s12  ;;  %s952_s28 = sshll.u32 %s278_s7, 4  ;;  %s953_s28 = int_to_ptr.vmem [resolvable:$true] %s952_s28 }
  0x38   : > { %v1324_v3 = vld [vmem:[#allocation5 + $0xf8] sm:$0xff]  ;;  %731 = vmatpush.bf16.msra.mxu2 %v1316_v2  ;;  %v1323_v7 = vld [vmem:[#allocation5 + $0xf0] sm:$0xff]  ;;  %v1314_v10 = vld [vmem:[#allocation5 + $0xa8] sm:$0xff]  ;;  %s954_s26 = sshll.u32 %s951_s6, 4  ;;  %s940_s22 = scalar_lea.sflag [#allocation4], %s1733_s1  ;;  %s955_s26 = int_to_ptr.hbm [resolvable:$true] %s954_s26 }
  0x39   : > { %745 = vmatpush.bf16.msra.mxu3 %v1324_v3  ;;  %v1322_v11 = vld [vmem:[#allocation5 + $0xe8] sm:$0xff]  ;;  %v1297_v12 = vld [vmem:[#allocation5 + $0x20] sm:$0xff]  ;;  %v1296_v16 = vld [vmem:[#allocation5 + $0x18] sm:$0xff]  ;;  %s1541_s27 = sshra.s32 %s955_s26, 4  ;;  %s1547_s24 = scalar_lea.hbm %s1806_s5, 32  ;;  %s1542_s27 = int_to_ptr.hbm [resolvable:$true] %s1541_s27 }
  0x3a   : > { %704 = vmatpush.bf16.msra.mxu0 %v1299_v4  ;;  %v1305_v13 = vld [vmem:[#allocation5 + $0x60] sm:$0xff]  ;;  %v1304_v17 = vld [vmem:[#allocation5 + $0x58] sm:$0xff]  ;;  %v1295_v20 = vld [vmem:[#allocation5 + $0x10] sm:$0xff]  ;;  %s1543_s8 = scalar_lea.hbm %s1542_s27, 16  ;;  %p1548_p11 = scmp.lt.s32.totalorder %s1542_s27, %s1806_s5 }
  0x3b   : > { %718 = vmatpush.bf16.msra.mxu1 %v1307_v5  ;;  %v1313_v14 = vld [vmem:[#allocation5 + $0xa0] sm:$0xff]  ;;  %v1312_v18 = vld [vmem:[#allocation5 + $0x98] sm:$0xff]  ;;  %v1303_v21 = vld [vmem:[#allocation5 + $0x50] sm:$0xff]  ;;  %p1544_p1 = scmp.ne.s32.totalorder %s1542_s27, %s1543_s8  ;;  %p1549_p9 = scmp.lt.s32.totalorder %s1547_s24, %s1543_s8 }
  0x3c   : > { %732 = vmatpush.bf16.msra.mxu2 %v1315_v6  ;;  %v1321_v15 = vld [vmem:[#allocation5 + $0xe0] sm:$0xff]  ;;  %v1320_v19 = vld [vmem:[#allocation5 + $0xd8] sm:$0xff]  ;;  %v1311_v22 = vld [vmem:[#allocation5 + $0x90] sm:$0xff] }
  0x3d   : > { %746 = vmatpush.bf16.msra.mxu3 %v1323_v7  ;;  %v1319_v23 = vld [vmem:[#allocation5 + $0xd0] sm:$0xff]  ;;  %v1294_v24 = vld [vmem:[#allocation5 + $0x8] sm:$0xff]  ;;  %v1293_v28 = vld [vmem:[#allocation5] sm:$0xff]  ;;  %p1545_p4 = pnand %p1544_p1, %p1703_p3  ;;  %p1550_p2 = por %p1549_p9, %p1548_p11 }
  0x3e   : > { %705 = vmatpush.bf16.msra.mxu0 %v1298_v8  ;;  %v1302_v25 = vld [vmem:[#allocation5 + $0x48] sm:$0xff]  ;;  %v1301_v29 = vld [vmem:[#allocation5 + $0x40] sm:$0xff]  ;;  %v1332_v34 = vld [vmem:[#allocation5 + $0x138] sm:$0xff] }
  0x3f   : > { %719 = vmatpush.bf16.msra.mxu1 %v1306_v9  ;;  %v1310_v26 = vld [vmem:[#allocation5 + $0x88] sm:$0xff]  ;;  %v282_v30 = vld [vmem:[%s1737_s13] sm:$0xff]  ;;  %v1340_v35 = vld [vmem:[#allocation5 + $0x178] sm:$0xff]  ;;  %p1546_p8 = pneg %p1545_p4 }
  0x40   : > { %733 = vmatpush.bf16.msra.mxu2 %v1314_v10  ;;  %v1318_v27 = vld [vmem:[#allocation5 + $0xc8] sm:$0xff]  ;;  %v290_v33 = vld [vmem:[%s1737_s13 + $0x40] sm:$0xff]  ;;  %v284_v38 = vld [vmem:[%s1737_s13 + $0x10] sm:$0xff] }
  0x41   : > { %747 = vmatpush.bf16.msra.mxu3 %v1322_v11  ;;  %v289_v31 = vld [vmem:[%s1737_s13 + $0x38] sm:$0xff]  ;;  %v283_v32 = vld [vmem:[%s1737_s13 + $0x8] sm:$0xff]  ;;  %v1309_v36 = vld [vmem:[#allocation5 + $0x80] sm:$0xff]  ;;  %p1551_p10 = pnand %p1550_p2, %p1546_p8 }
  0x42   : > { %706 = vmatpush.bf16.msra.mxu0 %v1297_v12  ;;  %v1317_v37 = vld [vmem:[#allocation5 + $0xc0] sm:$0xff]  ;;  %v291_v39 = vld [vmem:[%s1737_s13 + $0x48] sm:$0xff]  ;;  %v296_v40 = vpack.c.bf16 %v289_v31, %v282_v30  ;;  %v285_v41 = vld [vmem:[%s1737_s13 + $0x18] sm:$0xff]  ;;  %v297_v43 = vpack.c.bf16 %v290_v33, %v283_v32 }
  0x43   : > { %720 = vmatpush.bf16.msra.mxu1 %v1305_v13  ;;  %v292_v42 = vld [vmem:[%s1737_s13 + $0x50] sm:$0xff]  ;;  %v298_v47 = vpack.c.bf16 %v291_v39, %v284_v38  ;;  %v1330_v49 = vld [vmem:[#allocation5 + $0x128] sm:$0xff]  ;;  %v1328_v53 = vld [vmem:[#allocation5 + $0x118] sm:$0xff] }
  0x44   : > { %734 = vmatpush.bf16.msra.mxu2 %v1313_v14  ;;  %v1341_v44 = vld [vmem:[#allocation5 + $0x180] sm:$0xff]  ;;  %v1331_v45 = vld [vmem:[#allocation5 + $0x130] sm:$0xff]  ;;  %v299_v48 = vpack.c.bf16 %v292_v42, %v285_v41  ;;  %v1338_v50 = vld [vmem:[#allocation5 + $0x168] sm:$0xff] }
  0x45   : > { %748 = vmatpush.bf16.msra.mxu3 %v1321_v15  ;;  %v1339_v46 = vld [vmem:[#allocation5 + $0x170] sm:$0xff]  ;;  %v1329_v51 = vld [vmem:[#allocation5 + $0x120] sm:$0xff]  ;;  %v1336_v54 = vld [vmem:[#allocation5 + $0x158] sm:$0xff] }
  0x46   : > { %707 = vmatpush.bf16.msra.mxu0 %v1296_v16  ;;  %v1337_v52 = vld [vmem:[#allocation5 + $0x160] sm:$0xff]  ;;  %v295_v56 = vld [vmem:[%s1737_s13 + $0x68] sm:$0xff]  ;;  %v1327_v57 = vld [vmem:[#allocation5 + $0x110] sm:$0xff] }
  0x47   : > { %721 = vmatpush.bf16.msra.mxu1 %v1304_v17  ;;  %v288_v55 = vld [vmem:[%s1737_s13 + $0x30] sm:$0xff]  ;;  %v1326_v60 = vld [vmem:[#allocation5 + $0x108] sm:$0xff]  ;;  %v286_v0 = vld [vmem:[%s1737_s13 + $0x20] sm:$0xff] }
  0x48   : > { %735 = vmatpush.bf16.msra.mxu2 %v1312_v18  ;;  %v1335_v58 = vld [vmem:[#allocation5 + $0x150] sm:$0xff]  ;;  %v302_v59 = vpack.c.bf16 %v295_v56, %v288_v55  ;;  %v1334_v61 = vld [vmem:[#allocation5 + $0x148] sm:$0xff]  ;;  %v1325_v62 = vld [vmem:[#allocation5 + $0x100] sm:$0xff] }
  0x49   : > { %749 = vmatpush.bf16.msra.mxu3 %v1320_v19  ;;  %v1333_v63 = vld [vmem:[#allocation5 + $0x140] sm:$0xff]  ;;  %v293_v1 = vld [vmem:[%s1737_s13 + $0x58] sm:$0xff]  ;;  %v287_v2 = vld [vmem:[%s1737_s13 + $0x28] sm:$0xff] }
  0x4a   : > { %708 = vmatpush.bf16.msra.mxu0 %v1295_v20  ;;  %v294_v3 = vld [vmem:[%s1737_s13 + $0x60] sm:$0xff]  ;;  %v300_v4 = vpack.c.bf16 %v293_v1, %v286_v0  ;;  %v1348_v7 = vld [vmem:[#allocation7 + $0x30] sm:$0xff]  ;;  %v1346_v9 = vld [vmem:[#allocation7 + $0x20] sm:$0xff] }
  0x4b   : > { %722 = vmatpush.bf16.msra.mxu1 %v1303_v21  ;;  %v301_v5 = vpack.c.bf16 %v294_v3, %v287_v2  ;;  %v1349_v6 = vld [vmem:[#allocation7 + $0x38] sm:$0xff]  ;;  %v1347_v8 = vld [vmem:[#allocation7 + $0x28] sm:$0xff]  ;;  %v1344_v11 = vld [vmem:[#allocation7 + $0x10] sm:$0xff] }
  0x4c   : > { %736 = vmatpush.bf16.msra.mxu2 %v1311_v22  ;;  %v1345_v10 = vld [vmem:[#allocation7 + $0x18] sm:$0xff]  ;;  %v1343_v12 = vld [vmem:[#allocation7 + $0x8] sm:$0xff]  ;;  %v1342_v16 = vld [vmem:[#allocation7] sm:$0xff] }
  0x4d   : > { %750 = vmatpush.bf16.msra.mxu3 %v1319_v23  ;;  %v1427_v17 = vld [vmem:[%s1803_s2] ss:$0 sm:$0xff] }
  0x4e   : > { %709 = vmatpush.bf16.msra.mxu0 %v1294_v24 }
  0x4f   : > { %723 = vmatpush.bf16.msra.mxu1 %v1302_v25 }
  0x50   : > { %737 = vmatpush.bf16.msra.mxu2 %v1310_v26 }
  0x51   : > { %751 = vmatpush.bf16.msra.mxu3 %v1318_v27 }
  0x52   : > { %710 = vmatpush.bf16.msra.mxu0 %v1293_v28 }
  0x53   : > { %724 = vmatpush.bf16.msra.mxu1 %v1301_v29 }
  0x54   : > { %738 = vmatpush.bf16.msra.mxu2 %v1309_v36 }
  0x55   : > { %752 = vmatpush.bf16.msra.mxu3 %v1317_v37  ;;  %711 = vmatmul.bf16.vlgmr.msra.gmra.mxu0 %v296_v40 }
  0x56   : > { %759 = vmatpush.bf16.msrb.mxu0 %v1332_v34  ;;  %725 = vmatmul.bf16.vlgmr.msra.gmra.mxu1 %v297_v43 }
  0x57   : > { %773 = vmatpush.bf16.msrb.mxu1 %v1340_v35  ;;  %739 = vmatmul.bf16.vlgmr.msra.gmra.mxu2 %v298_v47  ;;  %v1428_v47 = vld [vmem:[%s1805_s4] ss:$0 sm:$0xff] }
  0x58   : > { %794 = vmatpush.bf16.msrb.mxu2 %v1341_v44  ;;  %753 = vmatmul.bf16.vlgmr.msra.gmra.mxu3 %v299_v48 }
  0x59   : > { %872 = vmatpush.bf16.msrb.mxu3 %v1349_v6 }
  0x5a   : > { %760 = vmatpush.bf16.msrb.mxu0 %v1331_v45 }
  0x5b   : > { %774 = vmatpush.bf16.msrb.mxu1 %v1339_v46  ;;  %v888_v46 = vlaneseq }
  0x5d   : > { %873 = vmatpush.bf16.msrb.mxu3 %v1348_v7  ;;  %v889_v48 = vand.u32 127, %v888_v46 }
  0x5e   : > { %761 = vmatpush.bf16.msrb.mxu0 %v1330_v49 }
  0x5f   : > { %775 = vmatpush.bf16.msrb.mxu1 %v1338_v50  ;;  %vm890_vm1 = vcmp.lt.s32.totalorder %v889_v48, 10 }
  0x61   : > { %874 = vmatpush.bf16.msrb.mxu3 %v1347_v8 }
  0x62   : > { %762 = vmatpush.bf16.msrb.mxu0 %v1329_v51 }
  0x63   : > { %776 = vmatpush.bf16.msrb.mxu1 %v1337_v52 }
  0x65   : > { %875 = vmatpush.bf16.msrb.mxu3 %v1346_v9 }
  0x66   : > { %763 = vmatpush.bf16.msrb.mxu0 %v1328_v53 }
  0x67   : > { %777 = vmatpush.bf16.msrb.mxu1 %v1336_v54  ;;  %1255 = vmatmul.msk.bf16.vlgmr.msrb.gmra.mxu2 %vm699_vm0, %v302_v59 }
  0x69   : > { %876 = vmatpush.bf16.msrb.mxu3 %v1345_v10 }
  0x6a   : > { %764 = vmatpush.bf16.msrb.mxu0 %v1327_v57 }
  0x6b   : > { %778 = vmatpush.bf16.msrb.mxu1 %v1335_v58 }
  0x6d   : > { %877 = vmatpush.bf16.msrb.mxu3 %v1344_v11 }
  0x6e   : > { %765 = vmatpush.bf16.msrb.mxu0 %v1326_v60 }
  0x6f   : > { %779 = vmatpush.bf16.msrb.mxu1 %v1334_v61 }
  0x71   : > { %878 = vmatpush.bf16.msrb.mxu3 %v1343_v12 }
  0x72   : > { %766 = vmatpush.bf16.msrb.mxu0 %v1325_v62 }
  0x73   : > { %780 = vmatpush.bf16.msrb.mxu1 %v1333_v63 }
  0x75   : > { %767 = vmatmul.bf16.vlgmr.msrb.gmra.mxu0 %v300_v4  ;;  %879 = vmatpush.bf16.msrb.mxu3 %v1342_v16 }
  0x76   : > { %781 = vmatmul.bf16.vlgmr.msrb.gmra.mxu1 %v301_v5 }
  0xd2   : > { %v712_v13 = vpop.f32.mrf.mxu0 }
  0xd3   : > { %v726_v14 = vpop.f32.mrf.mxu1  ;;  %v713_v18 = vadd.f32 %v1427_v17, %v712_v13 }
  0xd5   : > { %v727_v22 = vadd.f32 %v726_v14, %v713_v18 }
  0xda   : > { %v740_v15 = vpop.f32.mrf.mxu2  ;;  %v714_v19 = vpop.f32.mrf.mxu0 }
  0xdb   : > { %v728_v20 = vpop.f32.mrf.mxu1  ;;  %v754_v23 = vpop.f32.mrf.mxu3  ;;  %v715_v24 = vadd.f32 %v1427_v17, %v714_v19  ;;  %v741_v25 = vadd.f32 %v740_v15, %v727_v22 }
  0xdd   : > { %v729_v26 = vadd.f32 %v728_v20, %v715_v24  ;;  %v755_v29 = vadd.f32 %v754_v23, %v741_v25 }
  0xe2   : > { %v742_v21 = vpop.f32.mrf.mxu2 }
  0xe3   : > { %v743_v31 = vadd.f32 %v742_v21, %v729_v26  ;;  %v756_v33 = vpop.f32.mrf.mxu3 }
  0xe5   : > { %v757_v34 = vadd.f32 %v756_v33, %v743_v31 }
  0xea   : > { %v796_v30 = vpop.f32.mrf.mxu2 }
  0xf2   : > { %v768_v27 = vpop.f32.mrf.mxu0  ;;  %v798_v41 = vpop.f32.mrf.mxu2 }
  0xf3   : > { %v782_v28 = vpop.f32.mrf.mxu1  ;;  %v769_v32 = vadd.f32 %v768_v27, %v755_v29 }
  0xf5   : > { %v783_v35 = vadd.f32 %v782_v28, %v769_v32 }
  0xf7   : > { %v797_v39 = vadd.f32 %v796_v30, %v783_v35 }
  0xf9   : > { %v801_v43 = vmax.f32 %v797_v39, 0.0 }
  0xfa   : > { %v770_v36 = vpop.f32.mrf.mxu0 }
  0xfb   : > { %v771_v37 = vadd.f32 %v770_v36, %v757_v34  ;;  %v784_v38 = vpop.f32.mrf.mxu1 }
  0xfd   : > { %v785_v40 = vadd.f32 %v784_v38, %v771_v37 }
  0xff   : > { %v799_v42 = vadd.f32 %v798_v41, %v785_v40 }
 0x101   : > { %v802_v44 = vmax.f32 %v799_v42, 0.0 }
 0x103   : > { %v803_v45 = vpack.c.bf16 %v802_v44, %v801_v43 }
 0x105   : > { %880 = vmatmul.bf16.vlgmr.msrb.gmra.mxu3 %v803_v45 }
 0x188   : > { %v881_v49 = vpop.f32.mrf.mxu3 }
 0x189   : > { %v882_v50 = vadd.f32 %v1428_v47, %v881_v49 }
 0x18b   : > { %v886_v51 = vmax.f32 %v882_v50, 0.0 }
 0x18d   : > { %v891_v52 = vsel %vm890_vm1, %v886_v51, -1e+30 }
 0x18e   : > { %893 = vmax.xlane.f32.xlu0 %v891_v52 }
 0x190   : > { %v883_v53 = vpop.f32.mrf.mxu3 }
 0x191   : > { %v884_v54 = vadd.f32 %v1428_v47, %v883_v53 }
 0x193   : > { %v887_v55 = vmax.f32 %v884_v54, 0.0 }
 0x195   : > { %v892_v56 = vsel %vm890_vm1, %v887_v55, -1e+30 }
 0x196   : > { %895 = vmax.xlane.f32.xlu0 %v892_v56 }
 0x201   : > { %v894_v57 = vpop.xlane.xlu0 %893 }
 0x202   : > { %v897_v58 = vsub.f32 %v891_v52, %v894_v57 }
 0x204   : > { %v899_v59 = vmul.f32 1.442695, %v897_v58 }
 0x206   : > { %1429 = vpow2.f32 %v899_v59 }
 0x209   : > { %v896_v60 = vpop.xlane.xlu0 %895 }
 0x20a   : > { %v898_v61 = vsub.f32 %v892_v56, %v896_v60 }
 0x20c   : > { %v1430_v62 = vpop.eup %1429  ;;  %v901_v63 = vmul.f32 1.442695, %v898_v61 }
 0x20d   : > { %903 = vadd.xlane.f32.xlu1 %v1430_v62 }
 0x20e   : > { %1431 = vpow2.f32 %v901_v63 }
 0x214   : > { %v1432_v0 = vpop.eup %1431 }
 0x215   : > { %905 = vadd.xlane.f32.xlu1 %v1432_v0 }
 0x280   : > { %v904_v1 = vpop.xlane.xlu1 %903 }
 0x281   : > { %1433 = vrcp.f32 %v904_v1  ;;  %v918_v6 = vand.u32 2147483648, %v904_v1  ;;  %v916_v8 = vand.u32 2147483647, %v904_v1  ;;  %vm912_vm3 = vweird.f32 %v904_v1 }
 0x283   : > { %v919_v11 = vor.u32 1.1754944e-38, %v918_v6  ;;  %vm917_vm5 = vcmp.eq.f32.partialorder %v916_v8, 8.507059e+37 }
 0x287   : > { %v1434_v2 = vpop.eup %1433 }
 0x288   : > { %v908_v3 = vmul.f32 %v1434_v2, %v904_v1  ;;  %v906_v4 = vpop.xlane.xlu1 %905  ;;  %vm913_vm2 = vweird.f32 %v1434_v2 }
 0x289   : > { %1435 = vrcp.f32 %v906_v4  ;;  %vm914_vm4 = vmor %vm912_vm3, %vm913_vm2  ;;  %v933_v17 = vand.u32 2147483648, %v906_v4  ;;  %v931_v19 = vand.u32 2147483647, %v906_v4  ;;  %vm927_vm7 = vweird.f32 %v906_v4 }
 0x28a   : > { %v909_v5 = vsub.f32 1.0, %v908_v3 }
 0x28b   : > { %v934_v21 = vor.u32 1.1754944e-38, %v933_v17  ;;  %vm932_vm9 = vcmp.eq.f32.partialorder %v931_v19, 8.507059e+37 }
 0x28c   : > { %v910_v7 = vmul.f32 %v1434_v2, %v909_v5 }
 0x28e   : > { %v911_v9 = vadd.f32 %v1434_v2, %v910_v7 }
 0x28f   : > { %v1436_v10 = vpop.eup %1435 }
 0x290   : > { %v915_v12 = vsel %vm914_vm4, %v1434_v2, %v911_v9  ;;  %v923_v13 = vmul.f32 %v1436_v10, %v906_v4  ;;  %vm928_vm6 = vweird.f32 %v1436_v10 }
 0x291   : > { %v920_v14 = vsel %vm917_vm5, %v919_v11, %v915_v12  ;;  %vm929_vm8 = vmor %vm927_vm7, %vm928_vm6 }
 0x292   : > { %v921_v15 = vmul.f32 %v1430_v62, %v920_v14  ;;  %v924_v16 = vsub.f32 1.0, %v923_v13 }
 0x294   : > { %v925_v18 = vmul.f32 %v1436_v10, %v924_v16  ;;  %937 = vst [vmem:[%s278_s7] sm:$0xff] %v921_v15 }
 0x296   : > { %v926_v20 = vadd.f32 %v1436_v10, %v925_v18 }
 0x298   : > { %v930_v22 = vsel %vm929_vm8, %v1436_v10, %v926_v20 }
 0x299   : > { %v935_v23 = vsel %vm932_vm9, %v934_v21, %v930_v22 }
 0x29a   : > { %v936_v24 = vmul.f32 %v1432_v0, %v935_v23 }
 0x29c   : > { %938 = vst [vmem:[%s278_s7 + $0x8] sm:$0xff] %v936_v24 }
 0x29d   : > { %1554 = shalt.err (!%p1551_p10)
}
 0x29e   : > { %s1605_s1 = smov 128   ;;  %s1606_s10 = smov 8  }
 0x29f   : > { %1364 = dma.vmem_to_hbm [thread:$0]  (%p1703_p3), %s953_s28, 256, %s955_s26, %s940_s22, %s1605_s1, %s1605_s1, %s1606_s10  }
 0x2a0 PF: > { %s969_s11 = sand.u32 1, %s1585_s18   ;;  %p1814_p12 = scmp.ge.s32.totalorder %s1597_s21, 2 }
 0x2a1   : > { %s970_s12 = scalar_lea.sflag [#allocation4], %s969_s11 }
 0x2a2   : > { %p1378_p13 = pnand %p1814_p12, %p1672_p6 }
 0x2a4   : > { %p1379_p0 = pneg %p1378_p13 }
 0x2a6   : > { %1580 = dma.done.wait (%p1379_p0), %s970_s12, 256  }
 0x2a7   : > { %1582 = vsyncadd (%p1379_p0), %s970_s12, 4294967040  ;;  %p19_p5 = scmp.ge.s32.totalorder %s1693_s14, 4   ;;  %s1815_s18 = smov %s1589_s19 }
 0x2a8   : > { %s1816_s19 = smov %s1593_s20  ;;  %s1817_s20 = smov %s1709_s23 }
 0x2a9   : > { %s1818_s21 = smov %s1693_s14  ;;  %21 = sbr.rel (!%p19_p5) target bundleno = 8 (0x8), region = 93 }
 0x2ae   :  { %976 = vsyncpa [#allocation3], 1 }
 0x2af   :  { %978 = vsyncpa [#allocation3 + $0x1], 1 }
 0x2b0   :  { %979 = vsyncpa [#allocation6], 1 }
 0x2b1   :  { %980 = vsyncpa [#allocation4], 1 }
 0x2b2   :  { %982 = vsyncpa [#allocation4 + $0x1], 1 }

</bundles_post_ra>
